<compile_context>
chip_gen: v6e
topology: v6e:2x2x1
jax: 0.10.0
libtpu: 0.0.40
codegen_flags: <defaults>
</compile_context>

<pallas_src>
import functools

import jax
import jax.numpy as jnp
from jax.experimental import pallas as pl
from jax.experimental.pallas import tpu as pltpu

IN_FEATURES = 2 * 27      # 54
H1 = 128
H2 = 64
OUT = 27
OUT_PAD = 128             # lane-dense output width (slice back to 27 lazily)
TILE_B = 4096             # batch tile (multiple of 8)
NEG_BIG = -1e30           # padding-lane bias -> exp() underflows to exactly 0
VMEM_LIMIT_BYTES = 32 * 1024 * 1024   # explicit so TILE_B=4096 is safe on v5e


def _round_up(n, m):
    return ((n + m - 1) // m) * m


def _pick_tile(batch, tile_b):
    """Batch tile: multiple of 8, <= tile_b, and (for batch > 512) small enough
    that the grid has >= 2 steps so v7x megacore can shard the batch axis."""
    if batch > 512:
        return min(tile_b, _round_up((batch + 1) // 2, 8))
    return min(tile_b, _round_up(batch, 8))


def _bf16_exp_supported():
    """bf16 EUP exp is only a win (and only exists) on v6e/v7x; never on v5e."""
    try:
        kind = jax.devices()[0].device_kind.lower()
    except Exception:
        return False
    return ("v6" in kind) or ("v7" in kind)


# ---------------------------------------------------------------------------
# Kernels
# ---------------------------------------------------------------------------
def _mlp_softmax(x_bf16, w1_ref, b1_ref, w2_ref, b2_ref, w3_ref, b3_ref,
                 o_ref, *, exp_bf16):
    """3 bf16 matmuls (f32 accum), f32 bias/relu, masked 128-lane softmax."""
    # fc1 + relu
    h1 = jnp.dot(x_bf16, w1_ref[...], preferred_element_type=jnp.float32)
    h1 = jnp.maximum(h1 + b1_ref[...], 0.0)
    # fc2 + relu
    h2 = jnp.dot(h1.astype(jnp.bfloat16), w2_ref[...],
                 preferred_element_type=jnp.float32)
    h2 = jnp.maximum(h2 + b2_ref[...], 0.0)
    # fc3 (padded to 128 lanes; pad lanes carry bias = -1e30)
    logits = jnp.dot(h2.astype(jnp.bfloat16), w3_ref[...],
                     preferred_element_type=jnp.float32)
    logits = logits + b3_ref[...]
    # numerically stable softmax over the lane axis; pad lanes contribute 0
    m = jnp.max(logits, axis=1, keepdims=True)
    z = logits - m
    if exp_bf16:
        e = jnp.exp(z.astype(jnp.bfloat16)).astype(jnp.float32)
    else:
        e = jnp.exp(z)
    denom = jnp.sum(e, axis=1, keepdims=True)
    o_ref[...] = (e * pl.reciprocal(denom, approx=True)).astype(o_ref.dtype)


def _dense_kernel(x_ref, w1_ref, b1_ref, w2_ref, b2_ref, w3_ref, b3_ref,
                  o_ref, *, exp_bf16):
    # x arrives as f32 one-hot; bf16 cast happens here (VPU, hidden under DMA).
    _mlp_softmax(x_ref[...].astype(jnp.bfloat16),
                 w1_ref, b1_ref, w2_ref, b2_ref, w3_ref, b3_ref, o_ref,
                 exp_bf16=exp_bf16)


def _index_kernel(idx_ref, w1_ref, b1_ref, w2_ref, b2_ref, w3_ref, b3_ref,
                  o_ref, *, exp_bf16):
    # Rebuild the (T, 54) one-hot block in VMEM from (T, 2) int32 indices.
    idx = idx_ref[...]                                        # (T, 2) int32
    tb = idx.shape[0]
    lane = jax.lax.broadcasted_iota(jnp.int32, (tb, IN_FEATURES), 1)
    onehot = (lane == idx[:, 0:1]) | (lane == (idx[:, 1:2] + 27))
    _mlp_softmax(onehot.astype(jnp.bfloat16),
                 w1_ref, b1_ref, w2_ref, b2_ref, w3_ref, b3_ref, o_ref,
                 exp_bf16=exp_bf16)


# ---------------------------------------------------------------------------
# Parameter prep (call ONCE per parameter set; do not re-run per forward call)
# ---------------------------------------------------------------------------
def prep_params(params):
    """Pre-transpose weights to (in, out) bf16; biases to (1, out) f32.
    fc3 is padded to 128 output lanes (zero weights, -1e30 bias)."""
    w1, b1, w2, b2, w3, b3 = params
    w1t = w1.T.astype(jnp.bfloat16)                                   # (54, 128)
    w2t = w2.T.astype(jnp.bfloat16)                                   # (128, 64)
    w3t = jnp.zeros((H2, OUT_PAD), jnp.float32).at[:, :OUT].set(w3.T)
    w3t = w3t.astype(jnp.bfloat16)                                    # (64, 128)
    b1r = b1.reshape(1, H1).astype(jnp.float32)
    b2r = b2.reshape(1, H2).astype(jnp.float32)
    b3r = jnp.full((1, OUT_PAD), NEG_BIG, jnp.float32).at[0, :OUT].set(b3)
    return w1t, b1r, w2t, b2r, w3t, b3r


# ---------------------------------------------------------------------------
# pallas_call wrapper
# ---------------------------------------------------------------------------
def _run(kernel, x_in, feat, prepped, tile_b, out_dtype):
    """x_in: (Bp, feat), Bp a multiple of tile_b. Returns (Bp, OUT_PAD) probs."""
    Bp = x_in.shape[0]
    grid = (Bp // tile_b,)
    w1t, b1r, w2t, b2r, w3t, b3r = prepped

    def const(shape):
        # Resident block: same block index every grid step -> no re-DMA.
        return pl.BlockSpec(shape, lambda i: (0, 0))

    return pl.pallas_call(
        kernel,
        out_shape=jax.ShapeDtypeStruct((Bp, OUT_PAD), out_dtype),
        grid=grid,
        in_specs=[
            pl.BlockSpec((tile_b, feat), lambda i: (i, 0)),   # streamed batch tile
            const((IN_FEATURES, H1)), const((1, H1)),
            const((H1, H2)), const((1, H2)),
            const((H2, OUT_PAD)), const((1, OUT_PAD)),
        ],
        out_specs=pl.BlockSpec((tile_b, OUT_PAD), lambda i: (i, 0)),
        compiler_params=pltpu.CompilerParams(
            dimension_semantics=("parallel",),                # megacore on v7x
            vmem_limit_bytes=VMEM_LIMIT_BYTES),
    )(x_in, w1t, b1r, w2t, b2r, w3t, b3r)


# ---------------------------------------------------------------------------
# Entry points
# ---------------------------------------------------------------------------
def two_gram_forward(x, prepped, *, tile_b=TILE_B, out_dtype=jnp.bfloat16,
                     return_padded=False, exp_bf16=None):
    """Dense path matching the nn.Module: x (B, 2, 27) float -> probs.

    Returns (B, 27) by default; with return_padded=True returns the raw
    (Bp, 128) bf16 slab (no extra slicing pass; index it lazily downstream)."""
    B = x.shape[0]
    tb = _pick_tile(B, tile_b)
    Bp = _round_up(B, tb)
    x2d = x.reshape(B, -1)                       # stays f32; cast in-kernel
    if Bp != B:
        x2d = jnp.pad(x2d, ((0, Bp - B), (0, 0)))
    if exp_bf16 is None:
        exp_bf16 = _bf16_exp_supported()
    kernel = functools.partial(_dense_kernel, exp_bf16=exp_bf16)
    out = _run(kernel, x2d, IN_FEATURES, prepped, tb, out_dtype)
    return out if return_padded else out[:B, :OUT]


def two_gram_forward_from_indices(idx, prepped, *, tile_b=TILE_B,
                                  out_dtype=jnp.bfloat16, return_padded=False,
                                  exp_bf16=None):
    """One-hot-aware path: idx (B, 2) int in [0, 27) -> probs.
    ~27x less input HBM traffic than the dense path."""
    B = idx.shape[0]
    tb = _pick_tile(B, tile_b)
    Bp = _round_up(B, tb)
    idx = idx.astype(jnp.int32)
    if Bp != B:
        idx = jnp.pad(idx, ((0, Bp - B), (0, 0)))
    if exp_bf16 is None:
        exp_bf16 = _bf16_exp_supported()
    kernel = functools.partial(_index_kernel, exp_bf16=exp_bf16)
    out = _run(kernel, idx, 2, prepped, tb, out_dtype)
    return out if return_padded else out[:B, :OUT]


# ---------------------------------------------------------------------------
# Reference / init / self-test
# ---------------------------------------------------------------------------
def init_params(key):
    """Mirror nn.Linear default init U(-1/sqrt(fan_in), 1/sqrt(fan_in))."""
    ks = jax.random.split(key, 6)

    def linear(kw, kb, fan_in, fan_out):
        bound = 1.0 / jnp.sqrt(fan_in)
        w = jax.random.uniform(kw, (fan_out, fan_in), jnp.float32, -bound, bound)
        b = jax.random.uniform(kb, (fan_out,), jnp.float32, -bound, bound)
        return w, b

    w1, b1 = linear(ks[0], ks[1], IN_FEATURES, H1)
    w2, b2 = linear(ks[2], ks[3], H1, H2)
    w3, b3 = linear(ks[4], ks[5], H2, OUT)
    return (w1, b1, w2, b2, w3, b3)


def reference_forward(x, params):
    w1, b1, w2, b2, w3, b3 = params
    h = x.reshape(x.shape[0], -1)
    h = jax.nn.relu(h @ w1.T + b1)
    h = jax.nn.relu(h @ w2.T + b2)
    logits = h @ w3.T + b3
    return jax.nn.softmax(logits, axis=1)


if __name__ == "__main__":
    key = jax.random.PRNGKey(0)
    k_param, k_x, k_x2 = jax.random.split(key, 3)
    params = init_params(k_param)
    prepped = prep_params(params)          # hoisted: prep once per param set

    # --- small batch (matches the module's toy usage) ---
    B = 8
    idx = jax.random.randint(k_x, (B, 2), 0, 27)
    x = jax.nn.one_hot(idx, 27, dtype=jnp.float32)            # (B, 2, 27)
    ref = reference_forward(x, params)

    out_dense = jax.block_until_ready(two_gram_forward(x, prepped))
    out_idx = jax.block_until_ready(two_gram_forward_from_indices(idx, prepped))

    assert out_dense.shape == (B, OUT)
    assert out_idx.shape == (B, OUT)
    od = out_dense.astype(jnp.float32)
    oi = out_idx.astype(jnp.float32)
    # bf16 matmuls + bf16 output + approx reciprocal -> relaxed tolerance.
    assert float(jnp.max(jnp.abs(od - ref))) < 1.5e-2
    assert float(jnp.max(jnp.abs(oi - ref))) < 1.5e-2
    assert jnp.allclose(jnp.sum(od, axis=1), jnp.ones((B,)), atol=3e-2)
    assert jnp.allclose(jnp.sum(oi, axis=1), jnp.ones((B,)), atol=3e-2)

    # padded (no-slice) fast path: raw lane-dense slab, index lazily downstream
    padded = jax.block_until_ready(
        two_gram_forward_from_indices(idx, prepped, return_padded=True))
    assert padded.shape == (B, OUT_PAD)
    assert float(jnp.max(jnp.abs(padded[:, :OUT].astype(jnp.float32) - ref))) < 1.5e-2

    # --- larger, non-tile-multiple batch: exercises grid>=2 (megacore) + pad ---
    B2 = 1200
    idx2 = jax.random.randint(k_x2, (B2, 2), 0, 27)
    x2 = jax.nn.one_hot(idx2, 27, dtype=jnp.float32)
    ref2 = reference_forward(x2, params)

    out2_dense = jax.block_until_ready(
        two_gram_forward(x2, prepped, tile_b=512))
    out2_idx = jax.block_until_ready(
        two_gram_forward_from_indices(idx2, prepped))   # default tile, grid=2

    assert out2_dense.shape == (B2, OUT)
    assert out2_idx.shape == (B2, OUT)
    assert float(jnp.max(jnp.abs(out2_dense.astype(jnp.float32) - ref2))) < 1.5e-2
    assert float(jnp.max(jnp.abs(out2_idx.astype(jnp.float32) - ref2))) < 1.5e-2

    print("KERNEL_OK")
</pallas_src>

<mosaic_0001>
module attributes {stable_mosaic.version = 11 : i64} {
  func.func @_dense_kernel(%arg0: i32, %arg1: memref<8x54xf32, #tpu.memory_space<vmem>>, %arg2: memref<54x128xbf16, #tpu.memory_space<vmem>>, %arg3: memref<1x128xf32, #tpu.memory_space<vmem>>, %arg4: memref<128x64xbf16, #tpu.memory_space<vmem>>, %arg5: memref<1x64xf32, #tpu.memory_space<vmem>>, %arg6: memref<64x128xbf16, #tpu.memory_space<vmem>>, %arg7: memref<1x128xf32, #tpu.memory_space<vmem>>, %arg8: memref<8x128xbf16, #tpu.memory_space<vmem>>) attributes {dimension_semantics = [#tpu.dimension_semantics<parallel>], iteration_bounds = array<i64: 1>, scalar_prefetch = 0 : i64, scratch_operands = 0 : i64, tpu.core_type = #tpu.core_type<tc>, window_params = [{transform_indices = @transform_0, window_bounds = array<i64: 8, 54>}, {pipeline_mode = #tpu.pipeline_mode<synchronous>, transform_indices = @transform_1, window_bounds = array<i64: 54, 128>}, {pipeline_mode = #tpu.pipeline_mode<synchronous>, transform_indices = @transform_2, window_bounds = array<i64: 1, 128>}, {pipeline_mode = #tpu.pipeline_mode<synchronous>, transform_indices = @transform_3, window_bounds = array<i64: 128, 64>}, {pipeline_mode = #tpu.pipeline_mode<synchronous>, transform_indices = @transform_4, window_bounds = array<i64: 1, 64>}, {pipeline_mode = #tpu.pipeline_mode<synchronous>, transform_indices = @transform_5, window_bounds = array<i64: 64, 128>}, {pipeline_mode = #tpu.pipeline_mode<synchronous>, transform_indices = @transform_6, window_bounds = array<i64: 1, 128>}, {transform_indices = @transform_7, window_bounds = array<i64: 8, 128>}]} {
    %c0 = arith.constant 0 : index
    %c0_0 = arith.constant 0 : index
    %0 = vector.load %arg1[%c0, %c0_0] : memref<8x54xf32, #tpu.memory_space<vmem>>, vector<8x54xf32>
    %1 = arith.truncf %0 : vector<8x54xf32> to vector<8x54xbf16>
    %c0_1 = arith.constant 0 : index
    %c0_2 = arith.constant 0 : index
    %2 = vector.load %arg2[%c0_1, %c0_2] : memref<54x128xbf16, #tpu.memory_space<vmem>>, vector<54x128xbf16>
    %cst = arith.constant dense<0.000000e+00> : vector<8x128xf32>
    %3 = tpu.matmul %1, %2, %cst {dimension_numbers = #tpu.dot_dimension_numbers<[1], [0], [0], [1], [0, 0, 1, 1], [], []>} : vector<8x54xbf16>, vector<54x128xbf16>, vector<8x128xf32> -> vector<8x128xf32>
    %c0_3 = arith.constant 0 : index
    %c0_4 = arith.constant 0 : index
    %4 = vector.load %arg3[%c0_3, %c0_4] : memref<1x128xf32, #tpu.memory_space<vmem>>, vector<1x128xf32>
    %5 = vector.broadcast %4 : vector<1x128xf32> to vector<8x128xf32>
    %6 = arith.addf %3, %5 : vector<8x128xf32>
    %cst_5 = arith.constant 0.000000e+00 : f32
    %7 = vector.broadcast %cst_5 : f32 to vector<8x128xf32>
    %8 = arith.maximumf %6, %7 : vector<8x128xf32>
    %9 = arith.truncf %8 : vector<8x128xf32> to vector<8x128xbf16>
    %c0_6 = arith.constant 0 : index
    %c0_7 = arith.constant 0 : index
    %10 = vector.load %arg4[%c0_6, %c0_7] : memref<128x64xbf16, #tpu.memory_space<vmem>>, vector<128x64xbf16>
    %cst_8 = arith.constant dense<0.000000e+00> : vector<8x64xf32>
    %11 = tpu.matmul %9, %10, %cst_8 {dimension_numbers = #tpu.dot_dimension_numbers<[1], [0], [0], [1], [0, 0, 1, 1], [], []>} : vector<8x128xbf16>, vector<128x64xbf16>, vector<8x64xf32> -> vector<8x64xf32>
    %c0_9 = arith.constant 0 : index
    %c0_10 = arith.constant 0 : index
    %12 = vector.load %arg5[%c0_9, %c0_10] : memref<1x64xf32, #tpu.memory_space<vmem>>, vector<1x64xf32>
    %13 = vector.broadcast %12 : vector<1x64xf32> to vector<8x64xf32>
    %14 = arith.addf %11, %13 : vector<8x64xf32>
    %cst_11 = arith.constant 0.000000e+00 : f32
    %15 = vector.broadcast %cst_11 : f32 to vector<8x64xf32>
    %16 = arith.maximumf %14, %15 : vector<8x64xf32>
    %17 = arith.truncf %16 : vector<8x64xf32> to vector<8x64xbf16>
    %c0_12 = arith.constant 0 : index
    %c0_13 = arith.constant 0 : index
    %18 = vector.load %arg6[%c0_12, %c0_13] : memref<64x128xbf16, #tpu.memory_space<vmem>>, vector<64x128xbf16>
    %cst_14 = arith.constant dense<0.000000e+00> : vector<8x128xf32>
    %19 = tpu.matmul %17, %18, %cst_14 {dimension_numbers = #tpu.dot_dimension_numbers<[1], [0], [0], [1], [0, 0, 1, 1], [], []>} : vector<8x64xbf16>, vector<64x128xbf16>, vector<8x128xf32> -> vector<8x128xf32>
    %c0_15 = arith.constant 0 : index
    %c0_16 = arith.constant 0 : index
    %20 = vector.load %arg7[%c0_15, %c0_16] : memref<1x128xf32, #tpu.memory_space<vmem>>, vector<1x128xf32>
    %21 = vector.broadcast %20 : vector<1x128xf32> to vector<8x128xf32>
    %22 = arith.addf %19, %21 : vector<8x128xf32>
    %cst_17 = arith.constant dense<0xFF800000> : vector<8xf32>
    %23 = vector.multi_reduction <maximumf>, %22, %cst_17 [1] : vector<8x128xf32> to vector<8xf32>
    %24 = vector.shape_cast %23 : vector<8xf32> to vector<8x1xf32>
    %25 = vector.broadcast %24 : vector<8x1xf32> to vector<8x128xf32>
    %26 = arith.subf %22, %25 : vector<8x128xf32>
    %27 = math.exp %26 : vector<8x128xf32>
    %cst_18 = arith.constant dense<0.000000e+00> : vector<8xf32>
    %28 = vector.multi_reduction <add>, %27, %cst_18 [1] : vector<8x128xf32> to vector<8xf32>
    %29 = vector.shape_cast %28 : vector<8xf32> to vector<8x1xf32>
    %30 = tpu.reciprocal %29 {approx = true} : vector<8x1xf32> -> vector<8x1xf32>
    %31 = vector.broadcast %30 : vector<8x1xf32> to vector<8x128xf32>
    %32 = arith.mulf %27, %31 : vector<8x128xf32>
    %33 = arith.truncf %32 : vector<8x128xf32> to vector<8x128xbf16>
    %c0_19 = arith.constant 0 : index
    %c0_20 = arith.constant 0 : index
    %34 = vector.load %arg8[%c0_19, %c0_20] : memref<8x128xbf16, #tpu.memory_space<vmem>>, vector<8x128xbf16>
    tpu.vector_store %arg8[%c0_19, %c0_20], %33 {strides = array<i32>} : memref<8x128xbf16, #tpu.memory_space<vmem>>, vector<8x128xbf16>,
    return
  }
  func.func @transform_0(%arg0: i32) -> (i32, i32) {
    %c0_i32 = arith.constant 0 : i32
    %c0_i32_0 = arith.constant 0 : i32
    return %arg0, %c0_i32 : i32, i32
  }
  func.func @transform_1(%arg0: i32) -> (i32, i32) {
    %c0_i32 = arith.constant 0 : i32
    %c0_i32_0 = arith.constant 0 : i32
    %c0_i32_1 = arith.constant 0 : i32
    return %c0_i32, %c0_i32_0 : i32, i32
  }
  func.func @transform_2(%arg0: i32) -> (i32, i32) {
    %c0_i32 = arith.constant 0 : i32
    %c0_i32_0 = arith.constant 0 : i32
    %c0_i32_1 = arith.constant 0 : i32
    return %c0_i32, %c0_i32_0 : i32, i32
  }
  func.func @transform_3(%arg0: i32) -> (i32, i32) {
    %c0_i32 = arith.constant 0 : i32
    %c0_i32_0 = arith.constant 0 : i32
    %c0_i32_1 = arith.constant 0 : i32
    return %c0_i32, %c0_i32_0 : i32, i32
  }
  func.func @transform_4(%arg0: i32) -> (i32, i32) {
    %c0_i32 = arith.constant 0 : i32
    %c0_i32_0 = arith.constant 0 : i32
    %c0_i32_1 = arith.constant 0 : i32
    return %c0_i32, %c0_i32_0 : i32, i32
  }
  func.func @transform_5(%arg0: i32) -> (i32, i32) {
    %c0_i32 = arith.constant 0 : i32
    %c0_i32_0 = arith.constant 0 : i32
    %c0_i32_1 = arith.constant 0 : i32
    return %c0_i32, %c0_i32_0 : i32, i32
  }
  func.func @transform_6(%arg0: i32) -> (i32, i32) {
    %c0_i32 = arith.constant 0 : i32
    %c0_i32_0 = arith.constant 0 : i32
    %c0_i32_1 = arith.constant 0 : i32
    return %c0_i32, %c0_i32_0 : i32, i32
  }
  func.func @transform_7(%arg0: i32) -> (i32, i32) {
    %c0_i32 = arith.constant 0 : i32
    %c0_i32_0 = arith.constant 0 : i32
    return %arg0, %c0_i32 : i32, i32
  }
}

</mosaic_0001>

<bundles_post_ra>
// kernel: tpu_custom_call.1
= control target key start
LH: loop header
LB: loop body
LE: loop exit
PB: predicated region body
PF: predicated region fallthrough
CT: control target
= control target key end

     0   :  { %v465_v1 = vmov 0.0   ;;  %vm69_vm0 = vcmask 1042432   ;;  %vm466_vm1 = vmmov 0   ;;  %s593_s0 = inlined_call_operand.vmem [shape: f32[8,54], index: 0, kind: input, shape index: {}]   ;;  %s594_s1 = inlined_call_operand.vmem [shape: bf16[54,128], index: 1, kind: input, shape index: {}]   ;;  %s595_s2 = inlined_call_operand.vmem [shape: f32[1,128], index: 2, kind: input, shape index: {}]   ;;  %s596_s3 = inlined_call_operand.vmem [shape: bf16[128,64], index: 3, kind: input, shape index: {}]   ;;  %s597_s4 = inlined_call_operand.vmem [shape: f32[1,64], index: 4, kind: input, shape index: {}]   ;;  %s598_s5 = inlined_call_operand.vmem [shape: bf16[64,128], index: 5, kind: input, shape index: {}]   ;;  %s599_s6 = inlined_call_operand.vmem [shape: f32[1,128], index: 6, kind: input, shape index: {}]   ;;  %s600_s7 = inlined_call_operand.hbm [shape: bf16[8,128], index: 7, kind: output, shape index: {}]  }
   0x1   :  { %v423_v0 = vld [vmem:[%s594_s1 + $0x18] ss:$0 sps:$4 sm:$0x77]   ;;  %376 = vmatprep.subr.bf16.mxu0 %v465_v1  ;;  %388 = vmatprep.subr.bf16.mxu1 %v465_v1  ;;  %v424_v3 = vld [vmem:[%s594_s1 + $0x10] sm:$0xff]   ;;  %v425_v5 = vld [vmem:[%s594_s1 + $0x8] sm:$0xff]  }
   0x2   :  { %v71_v2 = vsel %vm69_vm0, %v423_v0, 0  ;;  %384 = vmatprep.mubr.msk.bf16.mxu0 %vm466_vm1, %v465_v1  ;;  %v427_v4 = vld [vmem:[%s596_s3 + $0x38] sm:$0xff]   ;;  %404 = vmatprep.mubr.msk.bf16.mxu1 %vm466_vm1, %v465_v1  ;;  %v428_v6 = vld [vmem:[%s596_s3 + $0x30] sm:$0xff]   ;;  %v426_v7 = vld [vmem:[%s594_s1] sm:$0xff]  }
   0x3   :  { %377 = vmatpush3.bf16.msra.mxu0 %v71_v2  ;;  %389 = vmatpush3.bf16.msra.mxu1 %v427_v4  ;;  %v28_v8 = vld [vmem:[%s593_s0] sm:$0xff]  ;;  %v429_v9 = vld [vmem:[%s596_s3 + $0x28] sm:$0xff]  }
   0x4   :  { %378 = vmatprep.subr.bf16.mxu0 %v465_v1  ;;  %390 = vmatprep.subr.bf16.mxu1 %v465_v1  ;;  %v29_v10 = vpack.c.bf16 %v28_v8, %v28_v8 }
   0x7   :  { %379 = vmatpush3.bf16.msra.mxu0 %v424_v3  ;;  %391 = vmatpush3.bf16.msra.mxu1 %v428_v6 }
   0x8   :  { %380 = vmatprep.subr.bf16.mxu0 %v465_v1  ;;  %392 = vmatprep.subr.bf16.mxu1 %v465_v1 }
   0xb   :  { %381 = vmatpush3.bf16.msra.mxu0 %v425_v5 }
   0xc   :  { %382 = vmatprep.subr.bf16.mxu0 %v465_v1 }
   0xd   :  { %12 = vsyncpa [#allocation3], 0  ;;  %vm65_vm2 = vcmask 441344   ;;  %393 = vmatpush3.bf16.msra.mxu1 %v429_v9  ;;  %v430_v11 = vld [vmem:[%s596_s3 + $0x20] sm:$0xff]   ;;  %v431_v12 = vld [vmem:[%s596_s3 + $0x18] sm:$0xff]   ;;  %vm267_vm3 = vcmask 523264  }
   0xe   :  { %394 = vmatprep.subr.bf16.mxu1 %v465_v1  ;;  %v432_v13 = vld [vmem:[%s596_s3 + $0x10] sm:$0xff]   ;;  %v433_v14 = vld [vmem:[%s596_s3 + $0x8] sm:$0xff]   ;;  %v434_v15 = vld [vmem:[%s596_s3] sm:$0xff]  }
   0xf   :  { %383 = vmatpush3.bf16.msra.mxu0 %v426_v7  ;;  %v435_v16 = vld [vmem:[%s598_s5 + $0x18] sm:$0xff]   ;;  %v436_v17 = vld [vmem:[%s598_s5 + $0x10] sm:$0xff]   ;;  %v336_v18 = vld [vmem:[%s595_s2] ss:$0 sm:$0xff] }
  0x10   :  { %408 = vmatprep.subr.bf16.mxu0 %v465_v1  ;;  %v437_v26 = vld [vmem:[%s598_s5 + $0x8] sm:$0xff]   ;;  %v438_v27 = vld [vmem:[%s598_s5] sm:$0xff]  }
  0x11   :  { %395 = vmatpush3.bf16.msra.mxu1 %v430_v11  ;;  %v342_v28 = vld [vmem:[%s597_s4] ss:$0 sm:$0xff]  ;;  %s467_s4 = smov [#allocation2]  }
  0x12   :  { %385 = vmatmul.mubr.msk.bf16.vlgmr.msra.gmra.mxu0 %vm65_vm2, %v29_v10  ;;  %396 = vmatprep.subr.bf16.mxu1 %v465_v1  ;;  %v351_v36 = vld [vmem:[%s599_s6] ss:$0 sm:$0xff]  ;;  %s328_s5 = sshll.u32 %s467_s4, 4  ;;  %s329_s5 = int_to_ptr.vmem [resolvable:$true] %s328_s5 }
  0x13   :  { %416 = vmatprep.mubr.msk.bf16.mxu0 %vm466_vm1, %v465_v1  ;;  %409 = vmatpush3.bf16.msra.mxu0 %v435_v16  ;;  %s443_s6 = scalar_lea.vmem %s329_s5, 64  ;;  %p448_p1 = scmp.lt.s32.totalorder %s329_s5, %s329_s5 }
  0x14   :  { %410 = vmatprep.subr.bf16.mxu0 %v465_v1  ;;  %p444_p0 = scmp.ne.s32.totalorder %s329_s5, %s443_s6  ;;  %p449_p2 = scmp.lt.s32.totalorder %s443_s6, %s443_s6 }
  0x15   :  { %397 = vmatpush3.bf16.msra.mxu1 %v431_v12 }
  0x16   :  { %398 = vmatprep.subr.bf16.mxu1 %v465_v1  ;;  %p450_p3 = por %p449_p2, %p448_p1 }
  0x17   :  { %411 = vmatpush3.bf16.msra.mxu0 %v436_v17 }
  0x18   :  { %412 = vmatprep.subr.bf16.mxu0 %v465_v1  ;;  %p451_p4 = pnand %p450_p3, %p444_p0 }
  0x19   :  { %399 = vmatpush3.bf16.msra.mxu1 %v432_v13 }
  0x1a   :  { %400 = vmatprep.subr.bf16.mxu1 %v465_v1 }
  0x1b   :  { %413 = vmatpush3.bf16.msra.mxu0 %v437_v26 }
  0x1c   :  { %414 = vmatprep.subr.bf16.mxu0 %v465_v1 }
  0x1d   :  { %401 = vmatpush3.bf16.msra.mxu1 %v433_v14 }
  0x1e   :  { %402 = vmatprep.subr.bf16.mxu1 %v465_v1 }
  0x1f   :  { %415 = vmatpush3.bf16.msra.mxu0 %v438_v27 }
  0x21   :  { %403 = vmatpush3.bf16.msra.mxu1 %v434_v15 }
  0xd2   :  { %v107_v19 = vpop.f32.mrf.mxu0 }
  0xd3   :  { %v108_v20 = vadd.f32 %v336_v18, %v107_v19 }
  0xd4   :  { %v386_v21 = vpop.f32.mrf.mxu0 }
  0xd5   :  { %v113_v22 = vmax.f32 %v108_v20, 0.0 }
  0xd6   :  { %v110_v23 = vpop.f32.mrf.mxu0 }
  0xd7   :  { %v114_v24 = vpack.c.bf16 %v113_v22, %v113_v22 }
  0xd8   :  { %v387_v25 = vpop.f32.mrf.mxu0 }
  0xd9   :  { %405 = vmatmul.mubr.bf16.vlgmr.msra.gmra.mxu1 %v114_v24 }
 0x199   :  { %v220_v29 = vpop.f32.mrf.mxu1 }
 0x19a   :  { %v221_v30 = vadd.f32 %v342_v28, %v220_v29 }
 0x19b   :  { %v406_v31 = vpop.f32.mrf.mxu1 }
 0x19c   :  { %v226_v32 = vmax.f32 %v221_v30, 0.0 }
 0x19d   :  { %v223_v33 = vpop.f32.mrf.mxu1 }
 0x19e   :  { %v227_v34 = vpack.c.bf16 %v226_v32, %v226_v32 }
 0x19f   :  { %v407_v35 = vpop.f32.mrf.mxu1 }
 0x1a0   :  { %417 = vmatmul.mubr.msk.bf16.vlgmr.msra.gmra.mxu0 %vm267_vm3, %v227_v34 }
 0x260   :  { %v305_v37 = vpop.f32.mrf.mxu0 }
 0x261   :  { %v306_v38 = vadd.f32 %v351_v36, %v305_v37 }
 0x262   :  { %v418_v39 = vpop.f32.mrf.mxu0 }
 0x263   :  { %311 = vmax.xlane.f32.xlu0 %v306_v38 }
 0x264   :  { %v308_v40 = vpop.f32.mrf.mxu0 }
 0x266   :  { %v419_v41 = vpop.f32.mrf.mxu0 }
 0x2ec   :  { %v312_v42 = vpop.xlane.xlu0 %311 }
 0x2ed   :  { %v313_v43 = vsub.f32 %v306_v38, %v312_v42 }
 0x2ef   :  { %v314_v44 = vmul.f32 1.442695, %v313_v43 }
 0x2f1   :  { %439 = vpow2.f32 %v314_v44 }
 0x2fe   :  { %v440_v45 = vpop.eup %439 }
 0x2ff   :  { %316 = vadd.xlane.f32.xlu0 %v440_v45 }
 0x388   :  { %v317_v46 = vpop.xlane.xlu0 %316 }
 0x389   :  { %441 = vrcp.f32 %v317_v46 }
 0x396   :  { %v442_v47 = vpop.eup %441 }
 0x397   :  { %v319_v48 = vmul.f32 %v442_v47, %v440_v45 }
 0x399   :  { %v320_v49 = vpack.c.bf16 %v319_v48, %v319_v48 }
 0x39b   :  { %321 = vst [vmem:[#allocation2] sm:$0xf] %v320_v49 }
 0x39c   :  { %454 = shalt.err (!%p451_p4)
}
 0x39d   :  { %331 = dma.vmem_to_hbm [thread:$0]  %s329_s5, 64, %s600_s7, [#allocation3]  }
 0x39e   :  { %463 = dma.done.wait [#allocation3], 64  }
 0x39f   :  { %464 = vsyncadd [#allocation3], 4294967232 }
 0x3a0   :  { %335 = vsyncpa [#allocation3], 1 }

</bundles_post_ra>
